<compile_context>
chip_gen: v5e
topology: v5e:2x2
jax: 0.10.0
libtpu: 0.0.40
codegen_flags: <defaults>
</compile_context>

<pallas_src>
import functools

import jax
import jax.numpy as jnp
from jax.experimental import pallas as pl
from jax.experimental.pallas import tpu as pltpu

LANES = 128  # vreg lane width; all packed operands are lane-dense


def _round_up(n, m):
    return ((n + m - 1) // m) * m


# ----------------------------------------------------------------------------
# Kernel: fused 3-matmul MLP over one batch tile.
#   x_ref    : (TILE_B, r_w1)        bf16   (batch tile, feature-padded)
#   w_ref    : (r_w1 + 256, 128)     bf16   (W1 | W2 | W3 stacked, VMEM-resident)
#   b_ref    : (8, 128)              f32    (rows 0..2 = b1,b2,b3)
#   out_ref  : (TILE_B, 128)         f32    (lane 0 = value, lanes 1:1+A = mu)
# ----------------------------------------------------------------------------
def _actor_critic_kernel(x_ref, w_ref, b_ref, out_ref, *, r_w1):
    x = x_ref[...]                                       # (TILE_B, r_w1) bf16

    # Static, 16-row-aligned slices of the packed bf16 weight slab (no copies).
    w1 = w_ref[0:r_w1, :]                                # (r_w1, 128)
    w2 = w_ref[r_w1:r_w1 + LANES, :]                     # (128, 128) block-diag
    w3 = w_ref[r_w1 + LANES:r_w1 + 2 * LANES, :]         # (128, 128) block-diag

    # One aligned (8,128) f32 load for all biases; row extracts are cheap.
    bias = b_ref[...]
    b1 = bias[0:1, :]
    b2 = bias[1:2, :]
    b3 = bias[2:3, :]

    # bf16 MXU matmuls, f32 accumulation; bias add + ReLU stay in f32 (VPU).
    h = jnp.dot(x, w1, preferred_element_type=jnp.float32) + b1
    h = jnp.maximum(h, 0.0)
    h = jnp.dot(h.astype(jnp.bfloat16), w2, preferred_element_type=jnp.float32) + b2
    h = jnp.maximum(h, 0.0)
    out = jnp.dot(h.astype(jnp.bfloat16), w3, preferred_element_type=jnp.float32) + b3

    # Lane-dense store: lane 0 = value, lanes 1:1+num_outputs = mu, rest = 0.
    out_ref[...] = out.astype(out_ref.dtype)


# ----------------------------------------------------------------------------
# Parameter packing: 13 arrays -> one bf16 weight slab + one f32 bias slab.
# Done once, outside the per-step path.
# ----------------------------------------------------------------------------
def pack_params(p, num_inputs, num_outputs, hidden):
    h2 = 2 * hidden
    assert h2 <= LANES, "fused hidden width must fit one 128-lane MXU tile"
    assert 1 + num_outputs <= LANES

    # 16-row alignment: keeps bf16 sublane packing + slab slices aligned.
    r_w1 = _round_up(num_inputs, 16)

    w1 = jnp.zeros((r_w1, LANES), jnp.float32)
    w1 = w1.at[:num_inputs, :hidden].set(p["cw1"])
    w1 = w1.at[:num_inputs, hidden:h2].set(p["aw1"])

    w2 = jnp.zeros((LANES, LANES), jnp.float32)
    w2 = w2.at[:hidden, :hidden].set(p["cw2"])
    w2 = w2.at[hidden:h2, hidden:h2].set(p["aw2"])

    w3 = jnp.zeros((LANES, LANES), jnp.float32)
    w3 = w3.at[:hidden, 0:1].set(p["cw3"])
    w3 = w3.at[hidden:h2, 1:1 + num_outputs].set(p["aw3"])

    slab_w = jnp.concatenate([w1, w2, w3], axis=0).astype(jnp.bfloat16)

    bias = jnp.zeros((8, LANES), jnp.float32)
    bias = bias.at[0, :hidden].set(p["cb1"][0])
    bias = bias.at[0, hidden:h2].set(p["ab1"][0])
    bias = bias.at[1, :hidden].set(p["cb2"][0])
    bias = bias.at[1, hidden:h2].set(p["ab2"][0])
    bias = bias.at[2, 0:1].set(p["cb3"][0])
    bias = bias.at[2, 1:1 + num_outputs].set(p["ab3"][0])

    return slab_w, bias, r_w1


# ----------------------------------------------------------------------------
# Jitted wrapper: pad, tile the batch axis, call the kernel, slice outputs.
# ----------------------------------------------------------------------------
@functools.partial(jax.jit, static_argnames=("num_outputs", "r_w1", "tile_b"))
def actor_critic_forward(x, slab_w, bias_slab, log_std, *, num_outputs, r_w1, tile_b):
    """Fused ActorCritic forward. Returns (mu, std, value)."""
    assert tile_b % 16 == 0 and r_w1 % 16 == 0
    b, f = x.shape
    b_pad = _round_up(b, tile_b)

    x = x.astype(jnp.bfloat16)
    pad_rows = b_pad - b
    pad_cols = r_w1 - f
    if pad_rows or pad_cols:
        x = jnp.pad(x, ((0, pad_rows), (0, pad_cols)))

    slab_rows = r_w1 + 2 * LANES
    grid = (b_pad // tile_b,)

    out = pl.pallas_call(
        functools.partial(_actor_critic_kernel, r_w1=r_w1),
        out_shape=jax.ShapeDtypeStruct((b_pad, LANES), jnp.float32),
        grid=grid,
        in_specs=[
            pl.BlockSpec((tile_b, r_w1), lambda i: (i, 0)),        # x: batch-tiled
            pl.BlockSpec((slab_rows, LANES), lambda i: (0, 0)),    # weights: resident
            pl.BlockSpec((8, LANES), lambda i: (0, 0)),            # biases: resident
        ],
        out_specs=pl.BlockSpec((tile_b, LANES), lambda i: (i, 0)),
        compiler_params=pltpu.CompilerParams(
            dimension_semantics=("parallel",)),                    # megacore on v7x
    )(x, slab_w, bias_slab)

    value = out[:b, 0:1]
    mu = out[:b, 1:1 + num_outputs]
    # std is x-independent: exp + broadcast fuse here under jit.
    std = jnp.broadcast_to(jnp.exp(log_std), mu.shape)
    return mu, std, value


def pick_tile_b(b):
    """Large tiles for PPO-update batches (>=512, MXU-M fill); clamp for small."""
    if b >= 512:
        return 512
    return _round_up(b, 16)


# ----------------------------------------------------------------------------
# Init matching ActorCritic.init_weights:
# weights ~ N(0, 0.01), biases = 0.01, log_std = std * ones(1, num_outputs).
# Weights stored as [in, out] (transposed vs. torch's [out, in]).
# ----------------------------------------------------------------------------
def init_actor_critic_params(key, num_inputs, num_outputs, hidden_size, std=0.0):
    ks = jax.random.split(key, 6)

    def w(k, fan_in, fan_out):
        return (0.01 * jax.random.normal(k, (fan_in, fan_out))).astype(jnp.float32)

    def b(fan_out):
        return jnp.full((1, fan_out), 0.01, dtype=jnp.float32)

    return {
        # critic
        "cw1": w(ks[0], num_inputs, hidden_size), "cb1": b(hidden_size),
        "cw2": w(ks[1], hidden_size, hidden_size), "cb2": b(hidden_size),
        "cw3": w(ks[2], hidden_size, 1),           "cb3": b(1),
        # actor
        "aw1": w(ks[3], num_inputs, hidden_size), "ab1": b(hidden_size),
        "aw2": w(ks[4], hidden_size, hidden_size), "ab2": b(hidden_size),
        "aw3": w(ks[5], hidden_size, num_outputs), "ab3": b(num_outputs),
        # dist scale
        "log_std": jnp.full((1, num_outputs), std, dtype=jnp.float32),
    }


def reference_forward(x, p):
    """Pure-JAX f32 reference (unfused) for correctness checking."""
    h = jax.nn.relu(x @ p["cw1"] + p["cb1"])
    h = jax.nn.relu(h @ p["cw2"] + p["cb2"])
    value = h @ p["cw3"] + p["cb3"]
    a = jax.nn.relu(x @ p["aw1"] + p["ab1"])
    a = jax.nn.relu(a @ p["aw2"] + p["ab2"])
    mu = a @ p["aw3"] + p["ab3"]
    std = jnp.broadcast_to(jnp.exp(p["log_std"]), mu.shape)
    return mu, std, value


if __name__ == "__main__":
    key = jax.random.PRNGKey(0)
    k_param, k_x1, k_x2 = jax.random.split(key, 3)

    num_inputs, num_outputs, hidden = 16, 4, 32
    params = init_actor_critic_params(k_param, num_inputs, num_outputs, hidden, std=0.0)

    # Pack once (not on the per-step path).
    slab_w, bias_slab, r_w1 = pack_params(params, num_inputs, num_outputs, hidden)

    # bf16 MXU path -> compare against f32 reference with relaxed tolerance.
    TOL = 1e-2

    def check(x, tile_b):
        mu, std, value = actor_critic_forward(
            x, slab_w, bias_slab, params["log_std"],
            num_outputs=num_outputs, r_w1=r_w1, tile_b=tile_b)
        jax.block_until_ready((mu, std, value))
        mu_ref, std_ref, value_ref = reference_forward(x, params)
        assert mu.shape == (x.shape[0], num_outputs)
        assert std.shape == (x.shape[0], num_outputs)
        assert value.shape == (x.shape[0], 1)
        assert jnp.allclose(mu, mu_ref, atol=TOL)
        assert jnp.allclose(std, std_ref, atol=1e-6)
        assert jnp.allclose(value, value_ref, atol=TOL)

    # 1) Rollout-style small batch: single grid step.
    B1 = 8
    x1 = jax.random.normal(k_x1, (B1, num_inputs), dtype=jnp.float32)
    check(x1, tile_b=pick_tile_b(B1))

    # 2) PPO-update-style batch: exercises the batch grid (3 tiles of 32 rows)
    #    and the parallel (megacore) batch axis.
    B2 = 96
    x2 = jax.random.normal(k_x2, (B2, num_inputs), dtype=jnp.float32)
    check(x2, tile_b=32)

    # TODO(synk): torch.distributions.Normal / dist.sample() has no Pallas
    # equivalent; (mu, std) fully parameterize the returned distribution.
    print("KERNEL_OK")
</pallas_src>

<mosaic_0001>
module attributes {stable_mosaic.version = 11 : i64} {
  func.func @_actor_critic_kernel(%arg0: i32, %arg1: memref<16x16xbf16, #tpu.memory_space<vmem>>, %arg2: memref<272x128xbf16, #tpu.memory_space<vmem>>, %arg3: memref<8x128xf32, #tpu.memory_space<vmem>>, %arg4: memref<16x128xf32, #tpu.memory_space<vmem>>) attributes {dimension_semantics = [#tpu.dimension_semantics<parallel>], iteration_bounds = array<i64: 1>, scalar_prefetch = 0 : i64, scratch_operands = 0 : i64, tpu.core_type = #tpu.core_type<tc>, window_params = [{transform_indices = @transform_0, window_bounds = array<i64: 16, 16>}, {pipeline_mode = #tpu.pipeline_mode<synchronous>, transform_indices = @transform_1, window_bounds = array<i64: 272, 128>}, {pipeline_mode = #tpu.pipeline_mode<synchronous>, transform_indices = @transform_2, window_bounds = array<i64: 8, 128>}, {transform_indices = @transform_3, window_bounds = array<i64: 16, 128>}]} {
    %c0 = arith.constant 0 : index
    %c0_0 = arith.constant 0 : index
    %0 = vector.load %arg1[%c0, %c0_0] : memref<16x16xbf16, #tpu.memory_space<vmem>>, vector<16x16xbf16>
    %c0_1 = arith.constant 0 : index
    %c0_2 = arith.constant 0 : index
    %1 = vector.load %arg2[%c0_1, %c0_2] : memref<272x128xbf16, #tpu.memory_space<vmem>>, vector<16x128xbf16>
    %c16 = arith.constant 16 : index
    %c0_3 = arith.constant 0 : index
    %2 = vector.load %arg2[%c16, %c0_3] : memref<272x128xbf16, #tpu.memory_space<vmem>>, vector<128x128xbf16>
    %c144 = arith.constant 144 : index
    %c0_4 = arith.constant 0 : index
    %3 = vector.load %arg2[%c144, %c0_4] : memref<272x128xbf16, #tpu.memory_space<vmem>>, vector<128x128xbf16>
    %c0_5 = arith.constant 0 : index
    %c0_6 = arith.constant 0 : index
    %4 = vector.load %arg3[%c0_5, %c0_6] : memref<8x128xf32, #tpu.memory_space<vmem>>, vector<8x128xf32>
    %5 = vector.extract_strided_slice %4 {offsets = [0, 0], sizes = [1, 128], strides = [1, 1]} : vector<8x128xf32> to vector<1x128xf32>
    %6 = vector.extract_strided_slice %4 {offsets = [1, 0], sizes = [1, 128], strides = [1, 1]} : vector<8x128xf32> to vector<1x128xf32>
    %7 = vector.extract_strided_slice %4 {offsets = [2, 0], sizes = [1, 128], strides = [1, 1]} : vector<8x128xf32> to vector<1x128xf32>
    %cst = arith.constant dense<0.000000e+00> : vector<16x128xf32>
    %8 = tpu.matmul %0, %1, %cst {dimension_numbers = #tpu.dot_dimension_numbers<[1], [0], [0], [1], [0, 0, 1, 1], [], []>} : vector<16x16xbf16>, vector<16x128xbf16>, vector<16x128xf32> -> vector<16x128xf32>
    %9 = vector.broadcast %5 : vector<1x128xf32> to vector<16x128xf32>
    %10 = arith.addf %8, %9 : vector<16x128xf32>
    %cst_7 = arith.constant 0.000000e+00 : f32
    %11 = vector.broadcast %cst_7 : f32 to vector<16x128xf32>
    %12 = arith.maximumf %10, %11 : vector<16x128xf32>
    %13 = arith.truncf %12 : vector<16x128xf32> to vector<16x128xbf16>
    %cst_8 = arith.constant dense<0.000000e+00> : vector<16x128xf32>
    %14 = tpu.matmul %13, %2, %cst_8 {dimension_numbers = #tpu.dot_dimension_numbers<[1], [0], [0], [1], [0, 0, 1, 1], [], []>} : vector<16x128xbf16>, vector<128x128xbf16>, vector<16x128xf32> -> vector<16x128xf32>
    %15 = vector.broadcast %6 : vector<1x128xf32> to vector<16x128xf32>
    %16 = arith.addf %14, %15 : vector<16x128xf32>
    %cst_9 = arith.constant 0.000000e+00 : f32
    %17 = vector.broadcast %cst_9 : f32 to vector<16x128xf32>
    %18 = arith.maximumf %16, %17 : vector<16x128xf32>
    %19 = arith.truncf %18 : vector<16x128xf32> to vector<16x128xbf16>
    %cst_10 = arith.constant dense<0.000000e+00> : vector<16x128xf32>
    %20 = tpu.matmul %19, %3, %cst_10 {dimension_numbers = #tpu.dot_dimension_numbers<[1], [0], [0], [1], [0, 0, 1, 1], [], []>} : vector<16x128xbf16>, vector<128x128xbf16>, vector<16x128xf32> -> vector<16x128xf32>
    %21 = vector.broadcast %7 : vector<1x128xf32> to vector<16x128xf32>
    %22 = arith.addf %20, %21 : vector<16x128xf32>
    %c0_11 = arith.constant 0 : index
    %c0_12 = arith.constant 0 : index
    %23 = vector.load %arg4[%c0_11, %c0_12] : memref<16x128xf32, #tpu.memory_space<vmem>>, vector<16x128xf32>
    tpu.vector_store %arg4[%c0_11, %c0_12], %22 {strides = array<i32>} : memref<16x128xf32, #tpu.memory_space<vmem>>, vector<16x128xf32>,
    return
  }
  func.func @transform_0(%arg0: i32) -> (i32, i32) {
    %c0_i32 = arith.constant 0 : i32
    %c0_i32_0 = arith.constant 0 : i32
    return %arg0, %c0_i32 : i32, i32
  }
  func.func @transform_1(%arg0: i32) -> (i32, i32) {
    %c0_i32 = arith.constant 0 : i32
    %c0_i32_0 = arith.constant 0 : i32
    %c0_i32_1 = arith.constant 0 : i32
    return %c0_i32, %c0_i32_0 : i32, i32
  }
  func.func @transform_2(%arg0: i32) -> (i32, i32) {
    %c0_i32 = arith.constant 0 : i32
    %c0_i32_0 = arith.constant 0 : i32
    %c0_i32_1 = arith.constant 0 : i32
    return %c0_i32, %c0_i32_0 : i32, i32
  }
  func.func @transform_3(%arg0: i32) -> (i32, i32) {
    %c0_i32 = arith.constant 0 : i32
    %c0_i32_0 = arith.constant 0 : i32
    return %arg0, %c0_i32 : i32, i32
  }
}

</mosaic_0001>

<bundles_post_ra>
// kernel: actor_critic_forward.1
= control target key start
LH: loop header
LB: loop body
LE: loop exit
PB: predicated region body
PF: predicated region fallthrough
CT: control target
= control target key end

     0   :  { %8 = vsyncpa [#allocation3], 0  ;;  %s357_s15 = smov [#allocation2]   ;;  %s358_s17 = smov 64   ;;  %s395_s0 = inlined_call_operand.vmem [shape: bf16[16,16], index: 0, kind: input, shape index: {}]   ;;  %s396_s1 = inlined_call_operand.hbm [shape: bf16[272,128], index: 1, kind: input, shape index: {}]   ;;  %s397_s2 = inlined_call_operand.vmem [shape: f32[8,128], index: 2, kind: input, shape index: {}]   ;;  %s398_s3 = inlined_call_operand.vmem [shape: f32[16,128], index: 3, kind: output, shape index: {}]  }
   0x1   :  { %s15_s14 = sshll.u32 %s396_s1, 4  ;;  %s17_s16 = sshll.u32 %s357_s15, 4  ;;  %s16_s14 = int_to_ptr.hbm [resolvable:$true] %s15_s14  ;;  %s18_s16 = int_to_ptr.vmem [resolvable:$true] %s17_s16 }
   0x2   :  { %s359_s18 = smov 4  }
   0x3   :  { %23 = dma.hbm_to_vmem [thread:$0]  %s16_s14, 2176, %s18_s16, [#allocation3], %s358_s17, %s358_s17, %s359_s18  }
   0x4   :  { %355 = dma.done.wait [#allocation3], 2176  }
   0x5   :  { %356 = vsyncadd [#allocation3], 4294965120  ;;  %v311_v0 = vld [vmem:[#allocation2] sm:$0xff]  ;;  %vm80_vm0 = vcmask 130048   ;;  %v318_v3 = vld [vmem:[#allocation2 + $0x38] sm:$0xff] }
   0x6   :  { %v319_v1 = vld [vmem:[#allocation2 + $0x40] sm:$0xff]  ;;  %91 = vmatpush.bf16.msra.mxu0 %v311_v0  ;;  %v317_v4 = vld [vmem:[#allocation2 + $0x30] sm:$0xff]  ;;  %v316_v5 = vld [vmem:[#allocation2 + $0x28] sm:$0xff] }
   0x7   :  { %v310_v2 = vld [vmem:[%s395_s0] sm:$0xff]  ;;  %150 = vmatpush.bf16.msra.mxu1 %v319_v1  ;;  %v314_v7 = vld [vmem:[#allocation2 + $0x18] sm:$0xff]  ;;  %v313_v8 = vld [vmem:[#allocation2 + $0x10] sm:$0xff] }
   0x8   :  { %v315_v6 = vld [vmem:[#allocation2 + $0x20] sm:$0xff]  ;;  %v312_v9 = vld [vmem:[#allocation2 + $0x8] sm:$0xff]  ;;  %v326_v11 = vld [vmem:[#allocation2 + $0x78] sm:$0xff] }
   0x9   :  { %245 = vmatmul.msk.bf16.vlgmr.msra.gmra.mxu0 %vm80_vm0, %v310_v2  ;;  %v327_v10 = vld [vmem:[#allocation2 + $0x80] sm:$0xff]  ;;  %v325_v12 = vld [vmem:[#allocation2 + $0x70] sm:$0xff]  ;;  %v324_v13 = vld [vmem:[#allocation2 + $0x68] sm:$0xff] }
   0xa   :  { %216 = vmatpush.bf16.msra.mxu2 %v327_v10  ;;  %v67_v14 = vld [vmem:[%s397_s2] sm:$0xff]  ;;  %v322_v24 = vld [vmem:[#allocation2 + $0x58] sm:$0xff]  ;;  %v321_v25 = vld [vmem:[#allocation2 + $0x50] sm:$0xff] }
   0xb   :  { %151 = vmatpush.bf16.msra.mxu1 %v318_v3  ;;  %v68_v16 = vperm.slane %v67_v14, 0  ;;  %v323_v23 = vld [vmem:[#allocation2 + $0x60] sm:$0xff]  ;;  %v320_v26 = vld [vmem:[#allocation2 + $0x48] sm:$0xff]  ;;  %v101_v28 = vperm.slane %v67_v14, 1  ;;  %v167_v35 = vperm.slane %v67_v14, 2 }
   0xe   :  { %217 = vmatpush.bf16.msra.mxu2 %v326_v11 }
   0xf   :  { %152 = vmatpush.bf16.msra.mxu1 %v317_v4 }
  0x12   :  { %218 = vmatpush.bf16.msra.mxu2 %v325_v12 }
  0x13   :  { %153 = vmatpush.bf16.msra.mxu1 %v316_v5 }
  0x16   :  { %219 = vmatpush.bf16.msra.mxu2 %v324_v13 }
  0x17   :  { %154 = vmatpush.bf16.msra.mxu1 %v315_v6 }
  0x1a   :  { %220 = vmatpush.bf16.msra.mxu2 %v323_v23 }
  0x1b   :  { %155 = vmatpush.bf16.msra.mxu1 %v314_v7 }
  0x1e   :  { %221 = vmatpush.bf16.msra.mxu2 %v322_v24 }
  0x1f   :  { %156 = vmatpush.bf16.msra.mxu1 %v313_v8 }
  0x22   :  { %222 = vmatpush.bf16.msra.mxu2 %v321_v25 }
  0x23   :  { %157 = vmatpush.bf16.msra.mxu1 %v312_v9 }
  0x26   :  { %223 = vmatpush.bf16.msra.mxu2 %v320_v26 }
  0x86   :  { %v93_v15 = vpop.f32.mrf.mxu0 }
  0x87   :  { %v94_v17 = vadd.f32 %v93_v15, %v68_v16 }
  0x89   :  { %v98_v20 = vmax.f32 %v94_v17, 0.0 }
  0x8e   :  { %v95_v18 = vpop.f32.mrf.mxu0 }
  0x8f   :  { %v96_v19 = vadd.f32 %v95_v18, %v68_v16 }
  0x91   :  { %v99_v21 = vmax.f32 %v96_v19, 0.0 }
  0x93   :  { %v100_v22 = vpack.c.bf16 %v99_v21, %v98_v20 }
  0x95   :  { %158 = vmatmul.bf16.vlgmr.msra.gmra.mxu1 %v100_v22 }
 0x112   :  { %v159_v27 = vpop.f32.mrf.mxu1 }
 0x113   :  { %v160_v29 = vadd.f32 %v159_v27, %v101_v28 }
 0x115   :  { %v164_v32 = vmax.f32 %v160_v29, 0.0 }
 0x11a   :  { %v161_v30 = vpop.f32.mrf.mxu1 }
 0x11b   :  { %v162_v31 = vadd.f32 %v161_v30, %v101_v28 }
 0x11d   :  { %v165_v33 = vmax.f32 %v162_v31, 0.0 }
 0x11f   :  { %v166_v34 = vpack.c.bf16 %v165_v33, %v164_v32 }
 0x121   :  { %224 = vmatmul.bf16.vlgmr.msra.gmra.mxu2 %v166_v34 }
 0x1a4   :  { %v225_v36 = vpop.f32.mrf.mxu2 }
 0x1a5   :  { %v226_v37 = vadd.f32 %v225_v36, %v167_v35 }
 0x1a7   :  { %230 = vst [vmem:[%s398_s3] sm:$0xff] %v226_v37 }
 0x1ac   :  { %v227_v38 = vpop.f32.mrf.mxu2 }
 0x1ad   :  { %v228_v39 = vadd.f32 %v227_v38, %v167_v35 }
 0x1af   :  { %231 = vst [vmem:[%s398_s3 + $0x8] sm:$0xff] %v228_v39 }
 0x1b0   :  { %236 = vsyncpa [#allocation3], 1 }

</bundles_post_ra>
